<compile_context>
chip_gen: v7x
topology: tpu7x:2x2x1
jax: 0.10.0
libtpu: 0.0.40
codegen_flags: <defaults>
</compile_context>

<pallas_src>
import functools

import jax
import jax.numpy as jnp
from jax.experimental import pallas as pl
from jax.experimental.pallas import tpu as pltpu

_EPS = 1e-4


def _round_up(x, m):
    return ((x + m - 1) // m) * m


def _sop_loss_kernel(idx_ref,     # VMEM (tb, 1) int32 : example indices tile
                     logits_ref,  # VMEM (tb, C)       : logits tile
                     label_ref,   # VMEM (tb, C)       : (soft) labels tile
                     u_ref,       # VMEM (E, 1) or (tb, 1)
                     v_ref,       # VMEM (E, C) or (tb, C)
                     out_ref,     # VMEM (8, c_pad)    : fused partials tile
                     *, true_b, tb, c_pad, gather_in_kernel):
    logits = logits_ref[...].astype(jnp.float32)        # (tb, C)
    label = label_ref[...].astype(jnp.float32)          # (tb, C)
    C = logits.shape[1]

    if gather_in_kernel:
        # u/v are fully resident in VMEM (constant block index); gather the
        # per-example rows with a one-hot matmul on the (otherwise idle) MXU.
        idx = idx_ref[...]                               # (tb, 1) int32
        u_all = u_ref[...].astype(jnp.float32)           # (E, 1)
        v_all = v_ref[...].astype(jnp.float32)           # (E, C)
        E = v_all.shape[0]
        sel = (jax.lax.broadcasted_iota(jnp.int32, (tb, E), 1)
               == idx).astype(jnp.float32)               # (tb, E)
        u_rows = jnp.dot(sel, u_all, preferred_element_type=jnp.float32)
        v_rows = jnp.dot(sel, v_all, preferred_element_type=jnp.float32)
    else:
        u_rows = u_ref[...].astype(jnp.float32)          # (tb, 1) pre-gathered
        v_rows = v_ref[...].astype(jnp.float32)          # (tb, C) pre-gathered

    u_sq = jnp.clip(u_rows * u_rows * label, 0.0, 1.0)
    v_sq = jnp.clip(v_rows * v_rows * (1.0 - label), 0.0, 1.0)

    # softmax(output); the row max is reused for the argmax one-hot below.
    lmax = jnp.max(logits, axis=1, keepdims=True)
    el = jnp.exp(logits - lmax)
    orig_pred = el / jnp.sum(el, axis=1, keepdims=True)

    # pred = clamp(L1-normalize(clamp(softmax + U^2 - V^2, eps)), eps, 1)
    pred = jnp.maximum(orig_pred + u_sq - v_sq, _EPS)
    l1 = jnp.maximum(jnp.sum(jnp.abs(pred), axis=1, keepdims=True), _EPS)
    pred = jnp.clip(pred / l1, _EPS, 1.0)

    # one_hot(argmax(output)): first-occurrence argmax, reusing lmax.
    col = jax.lax.broadcasted_iota(jnp.int32, logits.shape, 1)
    amin = jnp.min(jnp.where(logits == lmax, col, C), axis=1, keepdims=True)
    one_hot = (col == amin).astype(jnp.float32)

    # Mask rows past the true batch: the last tile may be partial and its tail
    # rows contain unspecified data (exp/log can make Inf/NaN), so masking
    # must be jnp.where — not a multiply.
    row = (pl.program_id(0) * tb
           + jax.lax.broadcasted_iota(jnp.int32, (tb, 1), 0))
    valid = row < true_b                                  # bool (tb, 1)

    ce_row = -jnp.sum(label * jnp.log(pred), axis=1, keepdims=True)
    mse_row = jnp.sum((one_hot + u_sq - v_sq - label) ** 2,
                      axis=1, keepdims=True)

    ce = jnp.sum(jnp.where(valid, ce_row, 0.0), axis=0, keepdims=True)   # (1,1)
    mse = jnp.sum(jnp.where(valid, mse_row, 0.0), axis=0, keepdims=True)  # (1,1)
    psum = jnp.sum(jnp.where(valid, pred, 0.0), axis=0, keepdims=True)    # (1,C)

    # Fuse everything into ONE lane-dense (8, c_pad) block -> single unmasked
    # store / single output DMA per grid step:
    #   row 0        : sum_b(pred)   (padded to c_pad lanes)
    #   row 1 lane 0 : partial CE sum
    #   row 2 lane 0 : partial MSE sum
    if c_pad > C:
        psum = jnp.concatenate(
            [psum, jnp.zeros((1, c_pad - C), jnp.float32)], axis=1)
    lane = jax.lax.broadcasted_iota(jnp.int32, (1, c_pad), 1)
    row_ce = jnp.where(lane == 0, ce, 0.0)
    row_mse = jnp.where(lane == 0, mse, 0.0)
    tile = jnp.concatenate(
        [psum, row_ce, row_mse, jnp.zeros((5, c_pad), jnp.float32)], axis=0)
    out_ref[...] = tile


@functools.partial(jax.jit, static_argnames=("block_batch",))
def sop_loss_forward(index, output, label, u, v, block_batch=1024):
    """Pallas forward for sop_loss. Returns the scalar loss."""
    B, C = output.shape
    E = u.shape[0]

    # --- batch tiling --------------------------------------------------------
    # tile must be a multiple of 8 (f32 sublanes); cap it so there are >= 4
    # tiles when possible (keeps both v7x TensorCores busy; harmless on 1-TC).
    tb = max(8, _round_up(min(block_batch, B), 8))
    tb = min(tb, max(8, _round_up(-(-B // 4), 8)))
    num_tiles = -(-B // tb)                       # no wrapper-side padding

    c_pad = _round_up(max(C, 1), 128)

    # In-kernel gather keeps u/v resident in VMEM and builds a (tb, E) one-hot;
    # only do it when that is cheap.
    # TODO(synk): for very large num_examp replace the wrapper-gather fallback
    # with a per-row make_async_copy DMA gather (memory_space=pl.ANY).
    gather_in_kernel = (E * (C + 1) * 4 <= (4 << 20)) and (tb * E * 4 <= (8 << 20))

    idx2d = index.reshape(B, 1).astype(jnp.int32)
    if gather_in_kernel:
        u_in, v_in = u, v
        u_spec = pl.BlockSpec((E, 1), lambda i: (0, 0))   # resident across grid
        v_spec = pl.BlockSpec((E, C), lambda i: (0, 0))
    else:
        u_in = jnp.take(u, index, axis=0)                 # (B, 1)
        v_in = jnp.take(v, index, axis=0)                 # (B, C)
        u_spec = pl.BlockSpec((tb, 1), lambda i: (i, 0))
        v_spec = pl.BlockSpec((tb, C), lambda i: (i, 0))

    # --- VMEM budget: double-buffered tiles + resident u/v + output + slack --
    # TODO(synk): for very large C add an inner "arbitrary" class-tiling axis
    # (online-softmax style) so the (tb, C) streams fit v7x's 64 MiB VMEM.
    bytes_tile = tb * C * (output.dtype.itemsize + label.dtype.itemsize) + tb * 4
    bytes_res = 0
    if gather_in_kernel:
        bytes_res = E * 4 + E * C * 4
    else:
        bytes_tile += tb * 4 + tb * C * 4
    bytes_out = 8 * c_pad * 4
    vmem_limit = int(min(40 << 20,
                         max(8 << 20,
                             2 * (bytes_tile + bytes_res + bytes_out) + (4 << 20))))

    kernel = functools.partial(_sop_loss_kernel, true_b=B, tb=tb, c_pad=c_pad,
                               gather_in_kernel=gather_in_kernel)

    part = pl.pallas_call(
        kernel,
        grid=(num_tiles,),
        in_specs=[
            pl.BlockSpec((tb, 1), lambda i: (i, 0)),   # index
            pl.BlockSpec((tb, C), lambda i: (i, 0)),   # output (logits)
            pl.BlockSpec((tb, C), lambda i: (i, 0)),   # label
            u_spec,                                    # u
            v_spec,                                    # v
        ],
        out_specs=pl.BlockSpec((None, 8, c_pad), lambda i: (i, 0, 0)),
        out_shape=jax.ShapeDtypeStruct((num_tiles, 8, c_pad), jnp.float32),
        compiler_params=pltpu.CompilerParams(
            dimension_semantics=("parallel",),
            vmem_limit_bytes=vmem_limit,
        ),
    )(idx2d, output, label, u_in, v_in)

    # Finalize the tiny cross-tile reductions; the balance-KL term is
    # non-linear in the global batch mean so it cannot fold per tile.
    psum = jnp.sum(part[:, 0, :C], axis=0)        # (C,)
    ce = jnp.sum(part[:, 1, 0])
    mse = jnp.sum(part[:, 2, 0])
    ce_loss = ce / B
    mse_loss = mse / B
    avg_pred = jnp.clip(psum / B, _EPS, 1.0)
    balance_kl = -jnp.sum(jnp.log(avg_pred)) / C
    return ce_loss + mse_loss + 0.1 * balance_kl


def _reference_forward(index, output, label, u, v):
    """Pure-JAX reference mirroring the PyTorch forward (for validation)."""
    eps = 1e-4
    B, C = output.shape
    u_sq = jnp.clip(u[index] ** 2 * label, 0.0, 1.0)
    v_sq = jnp.clip(v[index] ** 2 * (1.0 - label), 0.0, 1.0)
    orig = jax.nn.softmax(output, axis=1)
    pred = jnp.maximum(orig + u_sq - v_sq, eps)
    pred = pred / jnp.maximum(jnp.sum(jnp.abs(pred), axis=1, keepdims=True), eps)
    pred = jnp.clip(pred, eps, 1.0)
    one_hot = jax.nn.one_hot(jnp.argmax(output, axis=1), C, dtype=jnp.float32)
    mse = jnp.sum((one_hot + u_sq - v_sq - label) ** 2) / B
    ce = jnp.mean(-jnp.sum(label * jnp.log(pred), axis=-1))
    avg_pred = jnp.clip(jnp.mean(pred, axis=0), eps, 1.0)
    balance_kl = -jnp.sum((1.0 / C) * jnp.log(avg_pred))
    return ce + mse + 0.1 * balance_kl


if __name__ == "__main__":
    num_examp, num_classes, batch = 64, 10, 16
    key = jax.random.PRNGKey(0)
    k1, k2, k3, k4, k5 = jax.random.split(key, 5)

    # module parameters (init_param: normal, mean=0, std=1e-8)
    u = 1e-8 * jax.random.normal(k1, (num_examp, 1), dtype=jnp.float32)
    v = 1e-8 * jax.random.normal(k2, (num_examp, num_classes), dtype=jnp.float32)

    # deterministic example inputs
    index = jax.random.permutation(k3, num_examp)[:batch]
    output = jax.random.normal(k4, (batch, num_classes), dtype=jnp.float32)
    label_idx = jax.random.randint(k5, (batch,), 0, num_classes)
    label = jax.nn.one_hot(label_idx, num_classes, dtype=jnp.float32)

    # batch=16 with the >=4-tile cap -> tb=8, two grid tiles (exercises both
    # the pipeline and the in-kernel tail/row masking machinery).
    loss = sop_loss_forward(index, output, label, u, v)
    jax.block_until_ready(loss)

    ref = _reference_forward(index, output, label, u, v)
    assert jnp.allclose(loss, ref, rtol=1e-4, atol=1e-4), (loss, ref)

    print("KERNEL_OK")
</pallas_src>

<mosaic_0001>
module attributes {stable_mosaic.version = 11 : i64} {
  func.func @_sop_loss_kernel(%arg0: i32, %arg1: memref<8x1xi32, #tpu.memory_space<vmem>>, %arg2: memref<8x10xf32, #tpu.memory_space<vmem>>, %arg3: memref<8x10xf32, #tpu.memory_space<vmem>>, %arg4: memref<64x1xf32, #tpu.memory_space<vmem>>, %arg5: memref<64x10xf32, #tpu.memory_space<vmem>>, %arg6: memref<1x8x128xf32, #tpu.memory_space<vmem>>) attributes {dimension_semantics = [#tpu.dimension_semantics<parallel>], iteration_bounds = array<i64: 2>, scalar_prefetch = 0 : i64, scratch_operands = 0 : i64, tpu.core_type = #tpu.core_type<tc>, window_params = [{transform_indices = @transform_0, window_bounds = array<i64: 8, 1>}, {transform_indices = @transform_1, window_bounds = array<i64: 8, 10>}, {transform_indices = @transform_2, window_bounds = array<i64: 8, 10>}, {pipeline_mode = #tpu.pipeline_mode<synchronous>, transform_indices = @transform_3, window_bounds = array<i64: 64, 1>}, {pipeline_mode = #tpu.pipeline_mode<synchronous>, transform_indices = @transform_4, window_bounds = array<i64: 64, 10>}, {transform_indices = @transform_5, window_bounds = array<i64: 1, 8, 128>}]} {
    %c0 = arith.constant 0 : index
    %c0_0 = arith.constant 0 : index
    %0 = vector.load %arg2[%c0, %c0_0] : memref<8x10xf32, #tpu.memory_space<vmem>>, vector<8x10xf32>
    %c0_1 = arith.constant 0 : index
    %c0_2 = arith.constant 0 : index
    %1 = vector.load %arg3[%c0_1, %c0_2] : memref<8x10xf32, #tpu.memory_space<vmem>>, vector<8x10xf32>
    %c0_3 = arith.constant 0 : index
    %c0_4 = arith.constant 0 : index
    %2 = vector.load %arg1[%c0_3, %c0_4] : memref<8x1xi32, #tpu.memory_space<vmem>>, vector<8x1xi32>
    %c0_5 = arith.constant 0 : index
    %c0_6 = arith.constant 0 : index
    %3 = vector.load %arg4[%c0_5, %c0_6] : memref<64x1xf32, #tpu.memory_space<vmem>>, vector<64x1xf32>
    %c0_7 = arith.constant 0 : index
    %c0_8 = arith.constant 0 : index
    %4 = vector.load %arg5[%c0_7, %c0_8] : memref<64x10xf32, #tpu.memory_space<vmem>>, vector<64x10xf32>
    %5 = tpu.iota {dimensions = array<i32: 1>} : vector<8x64xi32>
    %6 = vector.broadcast %2 : vector<8x1xi32> to vector<8x64xi32>
    %7 = arith.cmpi eq, %5, %6 : vector<8x64xi32>
    %8 = arith.extui %7 : vector<8x64xi1> to vector<8x64xi32>
    %9 = arith.sitofp %8 : vector<8x64xi32> to vector<8x64xf32>
    %cst = arith.constant dense<0.000000e+00> : vector<8x1xf32>
    %10 = tpu.matmul %9, %3, %cst {dimension_numbers = #tpu.dot_dimension_numbers<[1], [0], [0], [1], [0, 0, 1, 1], [], []>} : vector<8x64xf32>, vector<64x1xf32>, vector<8x1xf32> -> vector<8x1xf32>
    %cst_9 = arith.constant dense<0.000000e+00> : vector<8x10xf32>
    %11 = tpu.matmul %9, %4, %cst_9 {dimension_numbers = #tpu.dot_dimension_numbers<[1], [0], [0], [1], [0, 0, 1, 1], [], []>} : vector<8x64xf32>, vector<64x10xf32>, vector<8x10xf32> -> vector<8x10xf32>
    %12 = arith.mulf %10, %10 : vector<8x1xf32>
    %13 = vector.broadcast %12 : vector<8x1xf32> to vector<8x10xf32>
    %14 = arith.mulf %13, %1 : vector<8x10xf32>
    %cst_10 = arith.constant 0.000000e+00 : f32
    %cst_11 = arith.constant 1.000000e+00 : f32
    %15 = vector.broadcast %cst_10 : f32 to vector<8x10xf32>
    %16 = arith.maximumf %15, %14 : vector<8x10xf32>
    %17 = vector.broadcast %cst_11 : f32 to vector<8x10xf32>
    %18 = arith.minimumf %17, %16 : vector<8x10xf32>
    %19 = arith.mulf %11, %11 : vector<8x10xf32>
    %cst_12 = arith.constant 1.000000e+00 : f32
    %20 = vector.broadcast %cst_12 : f32 to vector<8x10xf32>
    %21 = arith.subf %20, %1 : vector<8x10xf32>
    %22 = arith.mulf %19, %21 : vector<8x10xf32>
    %cst_13 = arith.constant 0.000000e+00 : f32
    %cst_14 = arith.constant 1.000000e+00 : f32
    %23 = vector.broadcast %cst_13 : f32 to vector<8x10xf32>
    %24 = arith.maximumf %23, %22 : vector<8x10xf32>
    %25 = vector.broadcast %cst_14 : f32 to vector<8x10xf32>
    %26 = arith.minimumf %25, %24 : vector<8x10xf32>
    %cst_15 = arith.constant dense<0xFF800000> : vector<8xf32>
    %27 = vector.multi_reduction <maximumf>, %0, %cst_15 [1] : vector<8x10xf32> to vector<8xf32>
    %28 = vector.shape_cast %27 : vector<8xf32> to vector<8x1xf32>
    %29 = vector.broadcast %28 : vector<8x1xf32> to vector<8x10xf32>
    %30 = arith.subf %0, %29 : vector<8x10xf32>
    %31 = math.exp %30 : vector<8x10xf32>
    %cst_16 = arith.constant dense<0.000000e+00> : vector<8xf32>
    %32 = vector.multi_reduction <add>, %31, %cst_16 [1] : vector<8x10xf32> to vector<8xf32>
    %33 = vector.shape_cast %32 : vector<8xf32> to vector<8x1xf32>
    %34 = vector.broadcast %33 : vector<8x1xf32> to vector<8x10xf32>
    %35 = arith.divf %31, %34 : vector<8x10xf32>
    %36 = arith.addf %35, %18 : vector<8x10xf32>
    %37 = arith.subf %36, %26 : vector<8x10xf32>
    %cst_17 = arith.constant 9.99999974E-5 : f32
    %38 = vector.broadcast %cst_17 : f32 to vector<8x10xf32>
    %39 = arith.maximumf %37, %38 : vector<8x10xf32>
    %40 = math.absf %39 : vector<8x10xf32>
    %cst_18 = arith.constant dense<0.000000e+00> : vector<8xf32>
    %41 = vector.multi_reduction <add>, %40, %cst_18 [1] : vector<8x10xf32> to vector<8xf32>
    %42 = vector.shape_cast %41 : vector<8xf32> to vector<8x1xf32>
    %cst_19 = arith.constant 9.99999974E-5 : f32
    %43 = vector.broadcast %cst_19 : f32 to vector<8x1xf32>
    %44 = arith.maximumf %42, %43 : vector<8x1xf32>
    %45 = vector.broadcast %44 : vector<8x1xf32> to vector<8x10xf32>
    %46 = arith.divf %39, %45 : vector<8x10xf32>
    %cst_20 = arith.constant 9.99999974E-5 : f32
    %cst_21 = arith.constant 1.000000e+00 : f32
    %47 = vector.broadcast %cst_20 : f32 to vector<8x10xf32>
    %48 = arith.maximumf %47, %46 : vector<8x10xf32>
    %49 = vector.broadcast %cst_21 : f32 to vector<8x10xf32>
    %50 = arith.minimumf %49, %48 : vector<8x10xf32>
    %51 = tpu.iota {dimensions = array<i32: 1>} : vector<8x10xi32>
    %52 = vector.broadcast %28 : vector<8x1xf32> to vector<8x10xf32>
    %53 = arith.cmpf oeq, %0, %52 : vector<8x10xf32>
    %c10_i32 = arith.constant 10 : i32
    %54 = vector.broadcast %c10_i32 : i32 to vector<8x10xi32>
    %55 = arith.select %53, %51, %54 : vector<8x10xi1>, vector<8x10xi32>
    %cst_22 = arith.constant dense<2147483647> : vector<8xi32>
    %56 = vector.multi_reduction <minsi>, %55, %cst_22 [1] : vector<8x10xi32> to vector<8xi32>
    %57 = vector.shape_cast %56 : vector<8xi32> to vector<8x1xi32>
    %58 = vector.broadcast %57 : vector<8x1xi32> to vector<8x10xi32>
    %59 = arith.cmpi eq, %51, %58 : vector<8x10xi32>
    %60 = arith.extui %59 : vector<8x10xi1> to vector<8x10xi32>
    %61 = arith.sitofp %60 : vector<8x10xi32> to vector<8x10xf32>
    %c8_i32 = arith.constant 8 : i32
    %62 = arith.muli %arg0, %c8_i32 : i32
    %63 = tpu.iota {dimensions = array<i32: 0>} : vector<8x1xi32>
    %64 = vector.broadcast %62 : i32 to vector<8x1xi32>
    %65 = arith.addi %64, %63 : vector<8x1xi32>
    %c16_i32 = arith.constant 16 : i32
    %66 = vector.broadcast %c16_i32 : i32 to vector<8x1xi32>
    %67 = arith.cmpi slt, %65, %66 : vector<8x1xi32>
    %68 = math.log %50 : vector<8x10xf32>
    %69 = arith.mulf %1, %68 : vector<8x10xf32>
    %cst_23 = arith.constant dense<0.000000e+00> : vector<8xf32>
    %70 = vector.multi_reduction <add>, %69, %cst_23 [1] : vector<8x10xf32> to vector<8xf32>
    %71 = vector.shape_cast %70 : vector<8xf32> to vector<8x1xf32>
    %cst_24 = arith.constant 0.000000e+00 : f32
    %72 = vector.broadcast %cst_24 : f32 to vector<8x1xf32>
    %73 = arith.subf %72, %71 : vector<8x1xf32>
    %74 = arith.addf %61, %18 : vector<8x10xf32>
    %75 = arith.subf %74, %26 : vector<8x10xf32>
    %76 = arith.subf %75, %1 : vector<8x10xf32>
    %77 = arith.mulf %76, %76 : vector<8x10xf32>
    %cst_25 = arith.constant dense<0.000000e+00> : vector<8xf32>
    %78 = vector.multi_reduction <add>, %77, %cst_25 [1] : vector<8x10xf32> to vector<8xf32>
    %79 = vector.shape_cast %78 : vector<8xf32> to vector<8x1xf32>
    %cst_26 = arith.constant 0.000000e+00 : f32
    %80 = vector.broadcast %cst_26 : f32 to vector<8x1xf32>
    %81 = arith.select %67, %73, %80 : vector<8x1xi1>, vector<8x1xf32>
    %cst_27 = arith.constant dense<0.000000e+00> : vector<1xf32>
    %82 = vector.multi_reduction <add>, %81, %cst_27 [0] : vector<8x1xf32> to vector<1xf32>
    %83 = vector.shape_cast %82 : vector<1xf32> to vector<1x1xf32>
    %cst_28 = arith.constant 0.000000e+00 : f32
    %84 = vector.broadcast %cst_28 : f32 to vector<8x1xf32>
    %85 = arith.select %67, %79, %84 : vector<8x1xi1>, vector<8x1xf32>
    %cst_29 = arith.constant dense<0.000000e+00> : vector<1xf32>
    %86 = vector.multi_reduction <add>, %85, %cst_29 [0] : vector<8x1xf32> to vector<1xf32>
    %87 = vector.shape_cast %86 : vector<1xf32> to vector<1x1xf32>
    %cst_30 = arith.constant 0.000000e+00 : f32
    %88 = vector.shape_cast %67 : vector<8x1xi1> to vector<8x1xi1>
    %89 = vector.broadcast %88 : vector<8x1xi1> to vector<8x10xi1>
    %90 = vector.broadcast %cst_30 : f32 to vector<8x10xf32>
    %91 = arith.select %89, %50, %90 : vector<8x10xi1>, vector<8x10xf32>
    %cst_31 = arith.constant dense<0.000000e+00> : vector<10xf32>
    %92 = vector.multi_reduction <add>, %91, %cst_31 [0] : vector<8x10xf32> to vector<10xf32>
    %93 = vector.shape_cast %92 : vector<10xf32> to vector<1x10xf32>
    %cst_32 = arith.constant 0.000000e+00 : f32
    %94 = vector.broadcast %cst_32 : f32 to vector<1x118xf32>
    %95 = tpu.concatenate %93, %94 in 1 : vector<1x10xf32>, vector<1x118xf32> -> vector<1x128xf32>
    %96 = tpu.iota {dimensions = array<i32: 1>} : vector<1x128xi32>
    %c0_i32 = arith.constant 0 : i32
    %97 = vector.broadcast %c0_i32 : i32 to vector<1x128xi32>
    %98 = arith.cmpi eq, %96, %97 : vector<1x128xi32>
    %cst_33 = arith.constant 0.000000e+00 : f32
    %99 = vector.shape_cast %83 : vector<1x1xf32> to vector<1x1xf32>
    %100 = vector.broadcast %99 : vector<1x1xf32> to vector<1x128xf32>
    %101 = vector.broadcast %cst_33 : f32 to vector<1x128xf32>
    %102 = arith.select %98, %100, %101 : vector<1x128xi1>, vector<1x128xf32>
    %c0_i32_34 = arith.constant 0 : i32
    %103 = vector.broadcast %c0_i32_34 : i32 to vector<1x128xi32>
    %104 = arith.cmpi eq, %96, %103 : vector<1x128xi32>
    %cst_35 = arith.constant 0.000000e+00 : f32
    %105 = vector.shape_cast %87 : vector<1x1xf32> to vector<1x1xf32>
    %106 = vector.broadcast %105 : vector<1x1xf32> to vector<1x128xf32>
    %107 = vector.broadcast %cst_35 : f32 to vector<1x128xf32>
    %108 = arith.select %104, %106, %107 : vector<1x128xi1>, vector<1x128xf32>
    %cst_36 = arith.constant 0.000000e+00 : f32
    %109 = vector.broadcast %cst_36 : f32 to vector<5x128xf32>
    %110 = tpu.concatenate %95, %102, %108, %109 in 0 : vector<1x128xf32>, vector<1x128xf32>, vector<1x128xf32>, vector<5x128xf32> -> vector<8x128xf32>
    %c0_37 = arith.constant 0 : index
    %c0_38 = arith.constant 0 : index
    %c0_39 = arith.constant 0 : index
    %111 = vector.load %arg6[%c0_37, %c0_38, %c0_39] : memref<1x8x128xf32, #tpu.memory_space<vmem>>, vector<1x8x128xf32>
    %112 = vector.shape_cast %111 : vector<1x8x128xf32> to vector<8x128xf32>
    %113 = vector.shape_cast %110 : vector<8x128xf32> to vector<1x8x128xf32>
    tpu.vector_store %arg6[%c0_37, %c0_38, %c0_39], %113 {strides = array<i32>} : memref<1x8x128xf32, #tpu.memory_space<vmem>>, vector<1x8x128xf32>,
    return
  }
  func.func @transform_0(%arg0: i32) -> (i32, i32) {
    %c0_i32 = arith.constant 0 : i32
    %c0_i32_0 = arith.constant 0 : i32
    return %arg0, %c0_i32 : i32, i32
  }
  func.func @transform_1(%arg0: i32) -> (i32, i32) {
    %c0_i32 = arith.constant 0 : i32
    %c0_i32_0 = arith.constant 0 : i32
    return %arg0, %c0_i32 : i32, i32
  }
  func.func @transform_2(%arg0: i32) -> (i32, i32) {
    %c0_i32 = arith.constant 0 : i32
    %c0_i32_0 = arith.constant 0 : i32
    return %arg0, %c0_i32 : i32, i32
  }
  func.func @transform_3(%arg0: i32) -> (i32, i32) {
    %c0_i32 = arith.constant 0 : i32
    %c0_i32_0 = arith.constant 0 : i32
    %c0_i32_1 = arith.constant 0 : i32
    return %c0_i32, %c0_i32_0 : i32, i32
  }
  func.func @transform_4(%arg0: i32) -> (i32, i32) {
    %c0_i32 = arith.constant 0 : i32
    %c0_i32_0 = arith.constant 0 : i32
    %c0_i32_1 = arith.constant 0 : i32
    return %c0_i32, %c0_i32_0 : i32, i32
  }
  func.func @transform_5(%arg0: i32) -> (i32, i32, i32) {
    %c0_i32 = arith.constant 0 : i32
    %c0_i32_0 = arith.constant 0 : i32
    %c0_i32_1 = arith.constant 0 : i32
    return %arg0, %c0_i32, %c0_i32_0 : i32, i32, i32
  }
}

</mosaic_0001>

<bundles_post_ra>
// kernel: sop_loss_forward.1
= control target key start
LH: loop header
LB: loop body
LE: loop exit
PB: predicated region body
PF: predicated region fallthrough
CT: control target
= control target key end

     0   :  { %s775_s18 = smov 0   ;;  %s877_s0 = inlined_call_operand.vmem [shape: s32[16,1], index: 0, kind: input, shape index: {}]   ;;  %s878_s1 = inlined_call_operand.vmem [shape: f32[16,10], index: 1, kind: input, shape index: {}]   ;;  %s879_s2 = inlined_call_operand.vmem [shape: f32[16,10], index: 2, kind: input, shape index: {}]   ;;  %s880_s3 = inlined_call_operand.vmem [shape: f32[64,1], index: 3, kind: input, shape index: {}]   ;;  %s881_s4 = inlined_call_operand.vmem [shape: f32[64,10], index: 4, kind: input, shape index: {}]   ;;  %s882_s5 = inlined_call_operand.vmem [shape: f32[2,8,128], index: 5, kind: output, shape index: {}]  }
   0x1 LB: > { %s781_s19 = sadd.s32 4294967295, %s739_s18   ;;  %p619_p0 = scmp.ge.s32.totalorder %s739_s18, 1  ;;  %s739_s18 = sphi %s775_s18, %s15_s18  }
   0x2   : > { %p204_p1 = scmp.lt.s32.totalorder %s739_s18, 3 }
   0x4   : > { %p205_p2 = pnand %p619_p0, %p204_p1 }
   0x5   : > { %p238_p3 = scmp.lt.s32.totalorder (!%p205_p2), %s781_s19, 1  ;;  %v257_v0 = vld [vmem:[%s880_s3] sm:$0xff] (!%p205_p2)  ;;  %v258_v1 = vld [vmem:[%s880_s3 + $0x8] sm:$0xff] (!%p205_p2)  ;;  %v741_v2 = vmov (!%p205_p2), 0   ;;  %v742_v3 = vmov (!%p205_p2), 0.0|0.0   ;;  %v259_v7 = vld [vmem:[%s880_s3 + $0x10] sm:$0xff] (!%p205_p2)  ;;  %v273_v30 = vlaneseq (!%p205_p2) }
   0x6   : > { %208 = sbr.rel (%p205_p2) target bundleno = 858 (0x35a), region = 40  ;;  %723 = vset.pattern.permute.xlu0 (!%p205_p2), %v741_v2  ;;  %687 = vmatprep.subr.bf16.mxu0 (!%p205_p2), %v742_v3  ;;  %v688_v4 = vpack.c.bf16 (!%p205_p2), %v258_v1, %v257_v0  ;;  %v265_v5 = vld [vmem:[%s881_s4] sm:$0xff] (!%p205_p2)  ;;  %v266_v6 = vld [vmem:[%s881_s4 + $0x8] sm:$0xff] (!%p205_p2)  ;;  %v260_v9 = vld [vmem:[%s880_s3 + $0x18] sm:$0xff] (!%p205_p2)  ;;  %vm743_vm0 = vmmov (!%p205_p2), 0   ;;  %v744_v25 = vmov (!%p205_p2), 0.0  }
   0x7   : > { %699 = vmatprep.subr.bf16.mxu1 (!%p205_p2), %v742_v3  ;;  %v700_v8 = vpack.c.bf16 (!%p205_p2), %v266_v6, %v265_v5  ;;  %v267_v10 = vld [vmem:[%s881_s4 + $0x10] sm:$0xff] (!%p205_p2)  ;;  %v268_v11 = vld [vmem:[%s881_s4 + $0x18] sm:$0xff] (!%p205_p2)  ;;  %724 = vset.pattern.permute.xlu1 (!%p205_p2), %v741_v2  ;;  %v691_v12 = vpack.c.bf16 (!%p205_p2), %v260_v9, %v259_v7  ;;  %v261_v14 = vld [vmem:[%s880_s3 + $0x20] sm:$0xff] (!%p205_p2)  ;;  %vm439_vm1 = vcmask (!%p205_p2), 80896   ;;  %v849_v31 = vand.u32 (!%p205_p2), 127, %v273_v30  ;;  %s628_s16 = sshll.u32 (!%p205_p2), %s781_s19, 3 }
   0x8   : > { %689 = vmatpush3.bf16.msra.mxu0 (!%p205_p2), %v688_v4  ;;  %v703_v13 = vpack.c.bf16 (!%p205_p2), %v268_v11, %v267_v10  ;;  %v262_v15 = vld [vmem:[%s880_s3 + $0x28] sm:$0xff] (!%p205_p2)  ;;  %v269_v16 = vld [vmem:[%s881_s4 + $0x20] sm:$0xff] (!%p205_p2)  ;;  %v263_v21 = vld [vmem:[%s880_s3 + $0x30] sm:$0xff] (!%p205_p2)  ;;  %665 = vmatprep.mubr.msk.f32.mxu0 (!%p205_p2), %vm743_vm0, %v744_v25  ;;  %vm281_vm2 = vcmask (!%p205_p2), 523264   ;;  %vm531_vm9 = vcmask (!%p205_p2), 1040384   ;;  %vm533_vm10 = vcmask (!%p205_p2), 1041408  }
   0x9   : > { %701 = vmatpush3.bf16.msra.mxu1 (!%p205_p2), %v700_v8  ;;  %690 = vmatprep.subr.bf16.mxu0 (!%p205_p2), %v742_v3  ;;  %v270_v17 = vld [vmem:[%s881_s4 + $0x28] sm:$0xff] (!%p205_p2)  ;;  %v694_v19 = vpack.c.bf16 (!%p205_p2), %v262_v15, %v261_v14  ;;  %v264_v22 = vld [vmem:[%s880_s3 + $0x38] sm:$0xff] (!%p205_p2)  ;;  %v271_v23 = vld [vmem:[%s881_s4 + $0x30] sm:$0xff] (!%p205_p2)  ;;  %vm528_vm8 = vcmp.eq.s32.totalorder (!%p205_p2), %v849_v31, 0  ;;  %vm535_vm11 = vcmask (!%p205_p2), 1042432  }
   0xa   : > { %702 = vmatprep.subr.bf16.mxu1 (!%p205_p2), %v742_v3  ;;  %v706_v20 = vpack.c.bf16 (!%p205_p2), %v270_v17, %v269_v16  ;;  %v272_v24 = vld [vmem:[%s881_s4 + $0x38] sm:$0xff] (!%p205_p2)  ;;  %684 = vmatprep.mubr.msk.f32.mxu1 (!%p205_p2), %vm743_vm0, %v744_v25  ;;  %v697_v26 = vpack.c.bf16 (!%p205_p2), %v264_v22, %v263_v21 }
   0xb   : > { %v709_v27 = vpack.c.bf16 (!%p205_p2), %v272_v24, %v271_v23 }
   0xc   : > { %692 = vmatpush3.bf16.msra.mxu0 (!%p205_p2), %v691_v12 }
   0xd   : > { %s239_s30 = scalar_select %p238_p3, %s781_s19, 1  ;;  %704 = vmatpush3.bf16.msra.mxu1 %v703_v13  ;;  %693 = vmatprep.subr.bf16.mxu0 %v742_v3 }
   0xe   : > { %705 = vmatprep.subr.bf16.mxu1 %v742_v3 }
   0xf   : > { %s811_s12 = sshll.u32 %s239_s30, 3 }
  0x10   : > { %s241_s21 = scalar_lea.vmem %s877_s0, %s811_s12  ;;  %695 = vmatpush3.bf16.msra.mxu0 %v694_v19  ;;  %s245_s11 = scalar_lea.vmem %s878_s1, %s811_s12 }
  0x11   : > { %v256_v18 = vld [vmem:[%s241_s21] sm:$0xff]  ;;  %707 = vmatpush3.bf16.msra.mxu1 %v706_v20  ;;  %696 = vmatprep.subr.bf16.mxu0 %v742_v3  ;;  %s249_s15 = scalar_lea.vmem %s879_s2, %s811_s12  ;;  %s253_s20 = scalar_lea.vmem %s882_s5, %s811_s12 }
  0x12   : > { %276 = vperm.xlu0 %723, %v256_v18   ;;  %708 = vmatprep.subr.bf16.mxu1 %v742_v3  ;;  %v254_v28 = vld [vmem:[%s245_s11] sm:$0xff] }
  0x13   : > { %v440_v29 = vsel %vm439_vm1, %v254_v28, -inf  ;;  %v255_v49 = vld [vmem:[%s249_s15] sm:$0xff] }
  0x14   : > { %698 = vmatpush3.bf16.msra.mxu0 %v697_v26  ;;  %v435_v51 = vsub.f32 1.0, %v255_v49 }
  0x15   : > { %710 = vmatpush3.bf16.msra.mxu1 %v709_v27 }
  0x31   : > { %441 = vmax.xlane.f32.xlu0 %v440_v29  ;;  %v486_v29 = vstv %s628_s16 }
  0x91   : > { %v277_v32 = vpop.permute.xlu0 %276 }
  0x92   : > { %vm278_vm3 = vcmp.eq.s32.totalorder %v849_v31, %v277_v32 }
  0x93   : > { %v624_v33 = vsel %vm278_vm3, 1.0, %v744_v25 }
  0x94   : > { %666 = vmatmul.mubr.msk.f32.vlgmr.msra.gmra.mrb[0].mxu0 %vm281_vm2, %v624_v33  ;;  %685 = vmatmul.mubr.msk.f32.vlgmr.msra.gmra.mrb[0].mxu1 %vm281_vm2, %v624_v33 }
  0xbe   : > { %v442_v34 = vpop.xlane.xlu0 %441 }
  0xbf   : > { %v443_v35 = vsub.f32 %v254_v28, %v442_v34  ;;  %vm463_vm4 = vcmp.eq.f32.partialorder %v254_v28, %v442_v34  ;;  %v485_v28 = vshrl.u32 %v273_v30, 7 }
  0xc0   : > { %v464_v44 = vsel %vm463_vm4, %v849_v31, 10 }
  0xc1   : > { %v444_v36 = vmul.f32 1.442695, %v443_v35  ;;  %v465_v45 = vsel %vm439_vm1, %v464_v44, 2147483647  ;;  %v487_v32 = vadd.s32 %v486_v29, %v485_v28 }
  0xc2   : > { %v467_v46 = vshra.s32 %v465_v45, 16  ;;  %v466_v2 = vand.u32 65535, %v465_v45 }
  0xc3   : > { %725 = vpow2.f32 %v444_v36  ;;  %vm488_vm7 = vcmp.lt.s32.totalorder %v487_v32, 16 }
  0xc4   : > { %v469_v47 = vcvt.s32.f32 %v467_v46  ;;  %v468_v4 = vcvt.s32.f32 %v466_v2 }
  0xcd   : > { %v726_v37 = vpop.eup %725 }
  0xce   : > { %v446_v38 = vsel %vm439_vm1, %v726_v37, 0.0 }
  0xcf   : > { %447 = vadd.xlane.f32.xlu1 %v446_v38 }
 0x15c   : > { %v448_v48 = vpop.xlane.xlu1 %447 }
 0x15d   : > { %727 = vrcp.f32 %v448_v48 }
 0x167   : > { %v351_v39 = vpop.f32.mrb[0].mxu0  ;;  %v421_v40 = vpop.f32.mrb[0].mxu1 }
 0x168   : > { %v425_v41 = vmul.f32 %v351_v39, %v351_v39  ;;  %v667_v42 = vpop.f32.mrb[1].mxu0  ;;  %v686_v43 = vpop.f32.mrb[1].mxu1  ;;  %v434_v50 = vmul.f32 %v421_v40, %v421_v40 }
 0x169   : > { %v728_v55 = vpop.eup %727 }
 0x16a   : > { %428 = vperm.xlu1 %724, %v425_v41   ;;  %v436_v52 = vmul.f32 %v435_v51, %v434_v50  ;;  %v450_v58 = vmul.f32 %v728_v55, %v726_v37 }
 0x16c   : > { %v437_v56 = vmax.f32 %v436_v52, 0.0 }
 0x16e   : > { %v438_v60 = vmin.f32 %v437_v56, 1.0 }
 0x18e   : > { %470 = vmin.xlane.f32.xlu1 %v469_v47 }
 0x1e9   : > { %v429_v53 = vpop.permute.xlu1 %428 }
 0x1ea   : > { %v431_v54 = vmul.f32 %v429_v53, %v255_v49 }
 0x1ec   : > { %v432_v57 = vmax.f32 %v431_v54, 0.0 }
 0x1ee   : > { %v433_v59 = vmin.f32 %v432_v57, 1.0 }
 0x1f0   : > { %v451_v61 = vadd.f32 %v450_v58, %v433_v59 }
 0x1f2   : > { %v452_v62 = vsub.f32 %v451_v61, %v438_v60 }
 0x1f4   : > { %v453_v63 = vmax.f32 %v452_v62, 0.0001 }
 0x1f6   : > { %v454_v0 = vand.u32 2147483647, %v453_v63 }
 0x1f8   : > { %v455_v1 = vsel %vm439_vm1, %v454_v0, 0.0 }
 0x1f9   : > { %456 = vadd.xlane.f32.xlu0 %v455_v1 }
 0x21b   : > { %v471_v3 = vpop.xlane.xlu1 %470 }
 0x21c   : > { %vm472_vm5 = vcmp.eq.f32.partialorder %v469_v47, %v471_v3  ;;  %v477_v15 = vcvt.f32.s32 %v471_v3 }
 0x21d   : > { %v473_v5 = vsel %vm472_vm5, %v468_v4, inf }
 0x21e   : > { %474 = vmin.xlane.f32.xlu0 %v473_v5  ;;  %v478_v18 = vshll.u32 %v477_v15, 16 }
 0x286   : > { %v457_v6 = vpop.xlane.xlu0 %456 }
 0x287   : > { %v458_v7 = vmax.f32 %v457_v6, 0.0001 }
 0x289   : > { %729 = vrcp.f32 %v458_v7 }
 0x293   : > { %v730_v8 = vpop.eup %729 }
 0x294   : > { %v460_v9 = vmul.f32 %v730_v8, %v453_v63 }
 0x296   : > { %v461_v10 = vmax.f32 %v460_v9, 0.0001 }
 0x298   : > { %v462_v11 = vmin.f32 %v461_v10, 1.0 }
 0x29a   : > { %731 = vlog2.f32 %v462_v11  ;;  %v519_v33 = vsel %vm488_vm7, %v462_v11, 0.0 }
 0x29b   : > { %v520_v36 = vsel %vm439_vm1, %v519_v33, 0.0 }
 0x29c   : > { %v521_v38 = vrot.slane %v520_v36, 4 }
 0x29e   : > { %v522_v40 = vadd.f32 %v521_v38, %v520_v36 }
 0x2a0   : > { %v523_v42 = vrot.slane %v522_v40, 2 }
 0x2a2   : > { %v524_v45 = vadd.f32 %v523_v42, %v522_v40 }
 0x2a4   : > { %v732_v12 = vpop.eup %731 }
 0x2a5   : > { %v490_v13 = vmul.f32 0.6931472, %v732_v12 }
 0x2a7   : > { %v491_v14 = vmul.f32 %v490_v13, %v255_v49 }
 0x2a9   : > { %v492_v16 = vsel %vm439_vm1, %v491_v14, 0.0 }
 0x2aa   : > { %493 = vadd.xlane.f32.xlu0 %v492_v16 }
 0x2ab   : > { %v475_v17 = vpop.xlane.xlu0 %474 }
 0x2ac   : > { %v476_v19 = vcvt.f32.s32 %v475_v17 }
 0x2ae   : > { %v479_v20 = vadd.s32 %v478_v18, %v476_v19 }
 0x2b0   : > { %vm480_vm6 = vcmp.eq.s32.totalorder %v849_v31, %v479_v20 }
 0x2b1   : > { %v627_v21 = vsel %vm480_vm6, 1.0, %v744_v25 }
 0x2b2   : > { %v496_v22 = vadd.f32 %v627_v21, %v433_v59 }
 0x2b4   : > { %v497_v23 = vsub.f32 %v496_v22, %v438_v60 }
 0x2b6   : > { %v498_v24 = vsub.f32 %v497_v23, %v255_v49  ;;  %v525_v49 = vrot.slane %v524_v45, 1 }
 0x2b8   : > { %v499_v26 = vmul.f32 %v498_v24, %v498_v24  ;;  %v526_v53 = vadd.f32 %v525_v49, %v524_v45 }
 0x2ba   : > { %v500_v27 = vsel %vm439_vm1, %v499_v26, 0.0  ;;  %v527_v57 = vsel %vm439_vm1, %v526_v53, 0.0 }
 0x2bb   : > { %501 = vadd.xlane.f32.xlu0 %v500_v27 }
 0x337   : > { %v494_v34 = vpop.xlane.xlu0 %493 }
 0x338   : > { %v495_v35 = vsub.f32 0.0, %v494_v34 }
 0x33a   : > { %v503_v37 = vsel %vm488_vm7, %v495_v35, 0.0 }
 0x33b   : > { %v504_v25 = vrot.slane %v503_v37, 4 }
 0x33d   : > { %v505_v39 = vadd.f32 %v504_v25, %v503_v37 }
 0x33f   : > { %v506_v41 = vrot.slane %v505_v39, 2 }
 0x341   : > { %v507_v43 = vadd.f32 %v506_v41, %v505_v39 }
 0x343   : > { %v508_v47 = vrot.slane %v507_v43, 1 }
 0x345   : > { %v509_v51 = vadd.f32 %v508_v47, %v507_v43 }
 0x347   : > { %v529_v55 = vsel %vm528_vm8, %v509_v51, 0.0 }
 0x348   : > { %v502_v44 = vpop.xlane.xlu0 %501  ;;  %v532_v58 = vsel %vm531_vm9, %v527_v57, %v529_v55 }
 0x349   : > { %v510_v46 = vsel %vm488_vm7, %v502_v44, 0.0 }
 0x34a   : > { %v511_v30 = vrot.slane %v510_v46, 4 }
 0x34c   : > { %v512_v48 = vadd.f32 %v511_v30, %v510_v46 }
 0x34e   : > { %v513_v50 = vrot.slane %v512_v48, 2 }
 0x350   : > { %v514_v52 = vadd.f32 %v513_v50, %v512_v48 }
 0x352   : > { %v515_v54 = vrot.slane %v514_v52, 1 }
 0x354   : > { %v516_v56 = vadd.f32 %v515_v54, %v514_v52 }
 0x356   : > { %v530_v59 = vsel %vm528_vm8, %v516_v56, 0.0 }
 0x357   : > { %v534_v60 = vsel %vm533_vm10, %v532_v58, %v530_v59 }
 0x358   : > { %v536_v61 = vsel %vm535_vm11, %v534_v60, 0.0 }
 0x359   : > { %537 = vst [vmem:[%s253_s20] sm:$0xff] %v536_v61 }
 0x35a PF: > { %s15_s18 = sadd.s32 1, %s739_s18  }
 0x35b   : > { %p12_p4 = scmp.ge.s32.totalorder %s15_s18, 4  }
 0x35d   :  { %14 = sbr.rel (!%p12_p4) target bundleno = 1 (0x1), region = 76 }

</bundles_post_ra>
